<compile_context>
chip_gen: v7x
topology: tpu7x:2x2x1
jax: 0.10.0
libtpu: 0.0.40
codegen_flags: <defaults>
</compile_context>

<pallas_src>
import functools

import jax
import jax.numpy as jnp
from jax.experimental import pallas as pl
from jax.experimental.pallas import tpu as pltpu


# ---------------------------------------------------------------------------
# Kernel 1: packed Q/K/V projection   y = x @ W_qkv + b_qkv ; split into q,k,v
# ---------------------------------------------------------------------------
def qkv_proj_kernel(x_ref, wqkv_ref, bqkv_ref, q_ref, k_ref, v_ref, *, d):
    x = x_ref[...].astype(jnp.bfloat16)                       # bf16 MXU operand
    y = jnp.dot(x, wqkv_ref[...],                             # wqkv already bf16
                preferred_element_type=jnp.float32)           # f32 accumulate
    y = y + bqkv_ref[...]                                     # bias add in f32
    # NOTE: for D not a multiple of 128 these column slices start off a lane
    # boundary; pad D end-to-end or split outside if that case matters.
    q_ref[...] = y[:, 0 * d:1 * d].astype(q_ref.dtype)
    k_ref[...] = y[:, 1 * d:2 * d].astype(k_ref.dtype)
    v_ref[...] = y[:, 2 * d:3 * d].astype(v_ref.dtype)


# ---------------------------------------------------------------------------
# Kernel 2: scaled dot-product attention over a block of pseudo-batches.
# (scale is pre-folded into wq/bq, so q arrives already scaled)
# ---------------------------------------------------------------------------
def attn_kernel(q_ref, k_ref, v_ref, o_ref):
    q = q_ref[...].astype(jnp.bfloat16)                       # [P, L, dh]
    k = k_ref[...].astype(jnp.bfloat16)
    v = v_ref[...].astype(jnp.bfloat16)
    # Batched contraction on the last dim: no explicit K transpose.
    s = jnp.einsum("hqd,hkd->hqk", q, k,
                   preferred_element_type=jnp.float32)        # [P, L, L] f32
    s = s - jnp.max(s, axis=-1, keepdims=True)                # stable softmax
    p = jnp.exp(s)                                            # f32 (EUP)
    denom = jnp.sum(p, axis=-1, keepdims=True)                # [P, L, 1] f32
    ctx = jnp.einsum("hqk,hkd->hqd", p.astype(jnp.bfloat16), v,
                     preferred_element_type=jnp.float32)      # [P, L, dh] f32
    # Exact normalization on the smaller ctx tensor (dh <= L).
    o_ref[...] = (ctx / denom).astype(o_ref.dtype)


# ---------------------------------------------------------------------------
# Kernel 3: output Linear + residual + LayerNorm (dropout p=0.0 is identity)
# ---------------------------------------------------------------------------
def out_kernel(ctx_ref, x_ref, w_ref, b_ref, g_ref, beta_ref, o_ref, *, eps):
    ctx = ctx_ref[...].astype(jnp.bfloat16)                   # bf16 MXU operand
    out = jnp.dot(ctx, w_ref[...],                            # wo already bf16
                  preferred_element_type=jnp.float32) + b_ref[...]
    out = out + x_ref[...]                                    # residual in f32
    mean = jnp.mean(out, axis=-1, keepdims=True)
    var = jnp.mean((out - mean) ** 2, axis=-1, keepdims=True) # biased, as in LN
    normed = (out - mean) * jax.lax.rsqrt(var + eps)
    o_ref[...] = normed * g_ref[...] + beta_ref[...]


# ---------------------------------------------------------------------------
# Helpers
# ---------------------------------------------------------------------------
def _pick_tile_m(m, target=512):
    """Largest row tile <= target that divides m with >= 2 grid steps.
    Prefers multiples of 16 (enables bf16 intermediates / megacore sharding),
    then multiples of 8.  Falls back to the full extent (single grid step,
    no pipelining) when m is not tileable — correct but unpipelined."""
    for step in (16, 8):
        if m % step == 0 and m // step >= 2:
            t = min(target, (m // 2) // step * step)
            while t >= step:
                if m % t == 0:
                    return t
                t -= step
    return m


def _pick_leading_block(n, row_bytes, target_bytes=1 << 20):
    """Largest divisor of n (pseudo-batch count) whose block stays under
    target_bytes per operand while leaving >= 2 grid steps (when n >= 2)."""
    best = 1
    for d in range(1, n + 1):
        if n % d:
            continue
        if n >= 2 and n // d < 2:
            continue
        if d * row_bytes > target_bytes:
            continue
        best = d
    return best


def _cparams(block_bytes):
    """VMEM limit derived from the per-step block bytes (covers double
    buffering + headroom), clamped so it also fits v7x's 64 MiB VMEM."""
    limit = int(min(64 * 1024 * 1024, max(32 * 1024 * 1024, 4 * block_bytes)))
    return pltpu.CompilerParams(
        dimension_semantics=("parallel",),
        vmem_limit_bytes=limit,
    )


def pack_params(p, num_head):
    """One-time weight transform: fold 1/sqrt(dh) into wq/bq, pack Q/K/V into a
    single wide [D, 3D] operand, and cast matmul weights to bf16."""
    D = p["wq"].shape[0]
    dh = D // num_head
    scale = float(dh) ** (-0.5)
    wqkv = jnp.concatenate([p["wq"] * scale, p["wk"], p["wv"]], axis=1)
    bqkv = jnp.concatenate([p["bq"] * scale, p["bk"], p["bv"]], axis=1)
    return {
        "wqkv": wqkv.astype(jnp.bfloat16),        # [D, 3D] bf16 MXU operand
        "bqkv": bqkv,                             # [1, 3D] f32 (added post-MXU)
        "wo": p["wo"].astype(jnp.bfloat16),       # [D, D]  bf16 MXU operand
        "bo": p["bo"],
        "gamma": p["gamma"], "beta": p["beta"],
    }


# ---------------------------------------------------------------------------
# Wrapper
# ---------------------------------------------------------------------------
def multi_head_attention(x, packed, num_head):
    B, L, D = x.shape
    assert D % num_head == 0
    dh = D // num_head
    M = B * L

    x2 = x.reshape(M, D)                          # row-major, free reshape

    tile_m = _pick_tile_m(M, target=512)
    grid_m = M // tile_m
    # bf16 HBM intermediates only when the row tile matches bf16 sublane
    # packing; otherwise keep f32 so the (tile_m, D) blocks stay layout-legal.
    io_dtype = jnp.bfloat16 if tile_m % 16 == 0 else jnp.float32
    io_bytes = jnp.dtype(io_dtype).itemsize

    row_spec = pl.BlockSpec((tile_m, D), lambda i: (i, 0))
    wqkv_spec = pl.BlockSpec((D, 3 * D), lambda i: (0, 0))
    bqkv_spec = pl.BlockSpec((1, 3 * D), lambda i: (0, 0))
    dd_spec = pl.BlockSpec((D, D), lambda i: (0, 0))
    vec_spec = pl.BlockSpec((1, D), lambda i: (0, 0))

    # --- packed Q/K/V projection (M-tiled, pipelined, bf16 MXU) --------------
    qkv_block_bytes = (tile_m * D * 4 + 3 * D * D * 2 + 3 * D * 4
                       + 3 * tile_m * D * io_bytes)
    qkv_cost = pl.CostEstimate(
        flops=2 * M * D * 3 * D,
        transcendentals=0,
        bytes_accessed=4 * M * D + 2 * 3 * D * D + 4 * 3 * D
                       + io_bytes * 3 * M * D)
    q, k, v = pl.pallas_call(
        functools.partial(qkv_proj_kernel, d=D),
        out_shape=(jax.ShapeDtypeStruct((M, D), io_dtype),) * 3,
        grid=(grid_m,),
        in_specs=[row_spec, wqkv_spec, bqkv_spec],
        out_specs=(row_spec, row_spec, row_spec),
        compiler_params=_cparams(qkv_block_bytes),
        cost_estimate=qkv_cost,
    )(x2, packed["wqkv"], packed["bqkv"])

    # Reproduce PyTorch's Q.view(batch*num_head, -1, dim_head): pure row-major
    # reshape of contiguous data (zero-cost at the XLA level).
    P = B * num_head
    qh = q.reshape(P, L, dh)
    kh = k.reshape(P, L, dh)
    vh = v.reshape(P, L, dh)

    # --- attention: multiple pseudo-batches per grid step ---------------------
    pb = _pick_leading_block(P, L * dh * io_bytes)
    head_spec = pl.BlockSpec((pb, L, dh), lambda i: (i, 0, 0))
    attn_block_bytes = 4 * pb * L * dh * io_bytes + 2 * pb * L * L * 4
    attn_cost = pl.CostEstimate(
        flops=4 * P * L * L * dh,
        transcendentals=P * L * L,
        bytes_accessed=io_bytes * 4 * P * L * dh)
    ctx = pl.pallas_call(
        attn_kernel,
        out_shape=jax.ShapeDtypeStruct((P, L, dh), io_dtype),
        grid=(P // pb,),
        in_specs=[head_spec, head_spec, head_spec],
        out_specs=head_spec,
        compiler_params=_cparams(attn_block_bytes),
        cost_estimate=attn_cost,
    )(qh, kh, vh)

    # context.view(batch, -1, dim_head * num_head) -> flatten rows (free reshape)
    ctx2 = ctx.reshape(M, D)

    # --- output Linear + residual + LayerNorm (M-tiled, pipelined) ------------
    out_block_bytes = (tile_m * D * io_bytes + 2 * tile_m * D * 4
                       + D * D * 2 + 3 * D * 4)
    out_cost = pl.CostEstimate(
        flops=2 * M * D * D,
        transcendentals=M,
        bytes_accessed=io_bytes * M * D + 2 * 4 * M * D + 2 * D * D + 4 * 3 * D)
    out = pl.pallas_call(
        functools.partial(out_kernel, eps=1e-5),
        out_shape=jax.ShapeDtypeStruct((M, D), jnp.float32),
        grid=(grid_m,),
        in_specs=[row_spec, row_spec, dd_spec, vec_spec, vec_spec, vec_spec],
        out_specs=row_spec,
        compiler_params=_cparams(out_block_bytes),
        cost_estimate=out_cost,
    )(ctx2, x2, packed["wo"], packed["bo"], packed["gamma"], packed["beta"])

    return out.reshape(B, L, D)


# ---------------------------------------------------------------------------
# Pure-JAX reference (mirrors the PyTorch forward) for a sanity check
# ---------------------------------------------------------------------------
def reference(x, params, num_head):
    B, L, D = x.shape
    dh = D // num_head
    q = x @ params["wq"] + params["bq"]
    k = x @ params["wk"] + params["bk"]
    v = x @ params["wv"] + params["bv"]
    q = q.reshape(B * num_head, L, dh)
    k = k.reshape(B * num_head, L, dh)
    v = v.reshape(B * num_head, L, dh)
    scale = dh ** (-0.5)
    att = jnp.einsum("bqd,bkd->bqk", q, k) * scale
    att = jax.nn.softmax(att, axis=-1)
    ctx = jnp.einsum("bqk,bkd->bqd", att, v).reshape(B, L, D)
    out = ctx @ params["wo"] + params["bo"]
    out = out + x
    mean = jnp.mean(out, axis=-1, keepdims=True)
    var = jnp.mean((out - mean) ** 2, axis=-1, keepdims=True)
    normed = (out - mean) / jnp.sqrt(var + 1e-5)
    return normed * params["gamma"] + params["beta"]


if __name__ == "__main__":
    B, L, D, H = 2, 8, 32, 4   # batch, seq_len, dim_model, num_head

    key = jax.random.PRNGKey(0)
    keys = jax.random.split(key, 9)

    def init_linear(kw, kb, fan_in, fan_out):
        # deterministic synthetic init (shapes match nn.Linear, stored as [in, out])
        w = jax.random.normal(kw, (fan_in, fan_out), jnp.float32) * 0.1
        b = jax.random.normal(kb, (1, fan_out), jnp.float32) * 0.1
        return w, b

    wq, bq = init_linear(keys[0], keys[1], D, D)
    wk, bk = init_linear(keys[2], keys[3], D, D)
    wv, bv = init_linear(keys[4], keys[5], D, D)
    wo, bo = init_linear(keys[6], keys[7], D, D)

    params = {
        "wq": wq, "bq": bq,
        "wk": wk, "bk": bk,
        "wv": wv, "bv": bv,
        "wo": wo, "bo": bo,
        "gamma": jnp.ones((1, D), jnp.float32),   # LayerNorm default init
        "beta": jnp.zeros((1, D), jnp.float32),
    }
    packed = pack_params(params, H)               # one-time weight packing (bf16)

    x = jax.random.normal(keys[8], (B, L, D), jnp.float32)

    out = jax.block_until_ready(multi_head_attention(x, packed, H))
    ref = jax.block_until_ready(reference(x, params, H))

    assert out.shape == (B, L, D)
    # bf16 MXU operands (f32 accumulation) vs the exact-f32 reference.
    assert jnp.allclose(out, ref, atol=2e-2, rtol=2e-2), \
        f"max abs err {jnp.max(jnp.abs(out - ref))}"

    print("KERNEL_OK")
</pallas_src>

<mosaic_0001>
module attributes {stable_mosaic.version = 11 : i64} {
  func.func @qkv_proj_kernel(%arg0: i32, %arg1: memref<8x32xf32, #tpu.memory_space<vmem>>, %arg2: memref<32x96xbf16, #tpu.memory_space<vmem>>, %arg3: memref<1x96xf32, #tpu.memory_space<vmem>>, %arg4: memref<8x32xf32, #tpu.memory_space<vmem>>, %arg5: memref<8x32xf32, #tpu.memory_space<vmem>>, %arg6: memref<8x32xf32, #tpu.memory_space<vmem>>) attributes {dimension_semantics = [#tpu.dimension_semantics<parallel>], iteration_bounds = array<i64: 2>, scalar_prefetch = 0 : i64, scratch_operands = 0 : i64, tpu.core_type = #tpu.core_type<tc>, window_params = [{transform_indices = @transform_0, window_bounds = array<i64: 8, 32>}, {pipeline_mode = #tpu.pipeline_mode<synchronous>, transform_indices = @transform_1, window_bounds = array<i64: 32, 96>}, {pipeline_mode = #tpu.pipeline_mode<synchronous>, transform_indices = @transform_2, window_bounds = array<i64: 1, 96>}, {transform_indices = @transform_3, window_bounds = array<i64: 8, 32>}, {transform_indices = @transform_4, window_bounds = array<i64: 8, 32>}, {transform_indices = @transform_5, window_bounds = array<i64: 8, 32>}]} {
    %c0 = arith.constant 0 : index
    %c0_0 = arith.constant 0 : index
    %0 = vector.load %arg1[%c0, %c0_0] : memref<8x32xf32, #tpu.memory_space<vmem>>, vector<8x32xf32>
    %1 = arith.truncf %0 : vector<8x32xf32> to vector<8x32xbf16>
    %c0_1 = arith.constant 0 : index
    %c0_2 = arith.constant 0 : index
    %2 = vector.load %arg2[%c0_1, %c0_2] : memref<32x96xbf16, #tpu.memory_space<vmem>>, vector<32x96xbf16>
    %cst = arith.constant dense<0.000000e+00> : vector<8x96xf32>
    %3 = tpu.matmul %1, %2, %cst {dimension_numbers = #tpu.dot_dimension_numbers<[1], [0], [0], [1], [0, 0, 1, 1], [], []>} : vector<8x32xbf16>, vector<32x96xbf16>, vector<8x96xf32> -> vector<8x96xf32>
    %c0_3 = arith.constant 0 : index
    %c0_4 = arith.constant 0 : index
    %4 = vector.load %arg3[%c0_3, %c0_4] : memref<1x96xf32, #tpu.memory_space<vmem>>, vector<1x96xf32>
    %5 = vector.broadcast %4 : vector<1x96xf32> to vector<8x96xf32>
    %6 = arith.addf %3, %5 : vector<8x96xf32>
    %7 = vector.extract_strided_slice %6 {offsets = [0, 0], sizes = [8, 32], strides = [1, 1]} : vector<8x96xf32> to vector<8x32xf32>
    %c0_5 = arith.constant 0 : index
    %c0_6 = arith.constant 0 : index
    %8 = vector.load %arg4[%c0_5, %c0_6] : memref<8x32xf32, #tpu.memory_space<vmem>>, vector<8x32xf32>
    tpu.vector_store %arg4[%c0_5, %c0_6], %7 {strides = array<i32>} : memref<8x32xf32, #tpu.memory_space<vmem>>, vector<8x32xf32>,
    %9 = vector.extract_strided_slice %6 {offsets = [0, 32], sizes = [8, 32], strides = [1, 1]} : vector<8x96xf32> to vector<8x32xf32>
    %c0_7 = arith.constant 0 : index
    %c0_8 = arith.constant 0 : index
    %10 = vector.load %arg5[%c0_7, %c0_8] : memref<8x32xf32, #tpu.memory_space<vmem>>, vector<8x32xf32>
    tpu.vector_store %arg5[%c0_7, %c0_8], %9 {strides = array<i32>} : memref<8x32xf32, #tpu.memory_space<vmem>>, vector<8x32xf32>,
    %11 = vector.extract_strided_slice %6 {offsets = [0, 64], sizes = [8, 32], strides = [1, 1]} : vector<8x96xf32> to vector<8x32xf32>
    %c0_9 = arith.constant 0 : index
    %c0_10 = arith.constant 0 : index
    %12 = vector.load %arg6[%c0_9, %c0_10] : memref<8x32xf32, #tpu.memory_space<vmem>>, vector<8x32xf32>
    tpu.vector_store %arg6[%c0_9, %c0_10], %11 {strides = array<i32>} : memref<8x32xf32, #tpu.memory_space<vmem>>, vector<8x32xf32>,
    return
  }
  func.func @transform_0(%arg0: i32) -> (i32, i32) {
    %c0_i32 = arith.constant 0 : i32
    %c0_i32_0 = arith.constant 0 : i32
    return %arg0, %c0_i32 : i32, i32
  }
  func.func @transform_1(%arg0: i32) -> (i32, i32) {
    %c0_i32 = arith.constant 0 : i32
    %c0_i32_0 = arith.constant 0 : i32
    %c0_i32_1 = arith.constant 0 : i32
    return %c0_i32, %c0_i32_0 : i32, i32
  }
  func.func @transform_2(%arg0: i32) -> (i32, i32) {
    %c0_i32 = arith.constant 0 : i32
    %c0_i32_0 = arith.constant 0 : i32
    %c0_i32_1 = arith.constant 0 : i32
    return %c0_i32, %c0_i32_0 : i32, i32
  }
  func.func @transform_3(%arg0: i32) -> (i32, i32) {
    %c0_i32 = arith.constant 0 : i32
    %c0_i32_0 = arith.constant 0 : i32
    return %arg0, %c0_i32 : i32, i32
  }
  func.func @transform_4(%arg0: i32) -> (i32, i32) {
    %c0_i32 = arith.constant 0 : i32
    %c0_i32_0 = arith.constant 0 : i32
    return %arg0, %c0_i32 : i32, i32
  }
  func.func @transform_5(%arg0: i32) -> (i32, i32) {
    %c0_i32 = arith.constant 0 : i32
    %c0_i32_0 = arith.constant 0 : i32
    return %arg0, %c0_i32 : i32, i32
  }
}

</mosaic_0001>

<bundles_post_ra>
// kernel: tpu_custom_call.1
= control target key start
LH: loop header
LB: loop body
LE: loop exit
PB: predicated region body
PF: predicated region fallthrough
CT: control target
= control target key end

     0   :  { %11 = vsyncpa [#allocation3], 0  ;;  %s1171_s0 = inlined_call_operand.hbm [shape: f32[16,32], index: 0, kind: input, shape index: {}]   ;;  %s1172_s1 = inlined_call_operand.hbm [shape: bf16[32,96], index: 1, kind: input, shape index: {}]   ;;  %s1173_s2 = inlined_call_operand.vmem [shape: f32[1,96], index: 2, kind: input, shape index: {}]   ;;  %s1174_s3 = inlined_call_operand.hbm [shape: f32[16,32], index: 3, kind: output, shape index: {0}]   ;;  %s1175_s4 = inlined_call_operand.hbm [shape: f32[16,32], index: 4, kind: output, shape index: {1}]   ;;  %s1176_s5 = inlined_call_operand.hbm [shape: f32[16,32], index: 5, kind: output, shape index: {2}]  }
   0x1   :  { %13 = vsyncpa [#allocation3 + $0x1], 0 }
   0x2   :  { %14 = vsyncpa [#allocation6], 0 }
   0x3   :  { %15 = vsyncpa [#allocation4], 0 }
   0x4   :  { %17 = vsyncpa [#allocation4 + $0x1], 0 }
   0x5   :  { %18 = vsyncpa [#allocation9], 0 }
   0x6   :  { %20 = vsyncpa [#allocation9 + $0x1], 0  ;;  %s885_s18 = smov 0   ;;  %s887_s19 = smov 0  }
   0x7   :  { %s889_s20 = smov 0   ;;  %s891_s21 = smov 0  }
   0x8 LB: > { %s906_s22 = sadd.s32 4294967295, %s842_s21   ;;  %s544_s23 = sadd.s32 4294967294, %s842_s21   ;;  %s842_s21 = sphi %s891_s21, %s1196_s21   ;;  %s838_s20 = sphi %s889_s20, %s1195_s20   ;;  %s834_s19 = sphi %s887_s19, %s1194_s19   ;;  %s830_s18 = sphi %s885_s18, %s1193_s18  }
   0x9   : > { %p46_p0 = scmp.ne.s32.totalorder %s834_s19, %s830_s18  ;;  %p1177_p1 = scmp.eq.s32.totalorder %s906_s22, 0 }
   0xa   : > { %p118_p3 = scmp.eq.s32.totalorder %s544_s23, 1  ;;  %p545_p5 = scmp.ge.s32.totalorder %s842_s21, 1 }
   0xb   : > { %p917_p4 = por %p1177_p1, %p46_p0  ;;  %p177_p7 = scmp.lt.s32.totalorder %s842_s21, 3 }
   0xc   : > { %p922_p6 = por %p118_p3, %p46_p0  ;;  %s844_s27 = smov [#allocation5]  }
   0xd   : > { %s1180_s24 = scalar_select %p917_p4, 1, 0 }
   0xe   : > { %s1181_s25 = scalar_select %p922_p6, 1, 0 }
   0xf   : > { %p927_p8 = pnand %p545_p5, %p177_p7  ;;  %s189_s28 = sshll.u32 %s844_s27, 4  ;;  %s931_s28 = int_to_ptr.vmem [resolvable:$true] %s189_s28 }
  0x10   : > { %s943_s30 = sadd.s32 1, %s842_s21   ;;  %s33_s6 = sadd.s32 1, %s838_s20 }
  0x11   : > { %s1182_s26 = scalar_select %p927_p8, 1, 0 }
  0x12   : > { %p591_p9 = pneg %p927_p8  ;;  %s30_s7 = ssub.s32 %s842_s21, %s943_s30 }
  0x13   : > { %s654_s10 = scalar_lea.hbm %s1172_s1, 256 }
  0x14   : > { %p938_p11 = pnand %p591_p9, %p1177_p1  ;;  %p655_p12 = scmp.ne.s32.totalorder %s1172_s1, %s654_s10 }
  0x15   : > { %p661_p5 = scmp.lt.u32.totalorder %s654_s10, %s1172_s1 }
  0x16   : > { %p656_p13 = pneg %p938_p11 }
  0x18   : > { %p657_p0 = pnand %p656_p13, %p655_p12 }
  0x1a   : > { %p658_p3 = pneg %p657_p0 }
  0x1c   : > { %p663_p7 = pnand %p661_p5, %p658_p3 }
  0x1e   : > { %666 = shalt.err (!%p663_p7)
}
  0x1f   : > { %s667_s15 = scalar_lea.vmem %s931_s28, 256  ;;  %p675_p2 = scmp.lt.s32.totalorder %s931_s28, %s931_s28 }
  0x20   : > { %p668_p9 = scmp.ne.s32.totalorder %s931_s28, %s667_s15  ;;  %p676_p6 = scmp.lt.s32.totalorder %s667_s15, %s667_s15 }
  0x22   : > { %p670_p10 = pnand %p668_p9, %p656_p13  ;;  %p677_p4 = por %p676_p6, %p675_p2 }
  0x24   : > { %p671_p1 = pneg %p670_p10 }
  0x26   : > { %p678_p8 = pnand %p677_p4, %p671_p1 }
  0x28   : > { %681 = shalt.err (!%p678_p8)
}
  0x29   : > { %s845_s16 = smov 64   ;;  %s846_s17 = smov 4  }
  0x2a   : > { %594 = dma.hbm_to_vmem [thread:$0]  (!%p938_p11), %s1172_s1, 256, %s931_s28, [#allocation6], %s845_s16, %s845_s16, %s846_s17  }
  0x2b   : > { %p31_p2 = scmp.eq.s32.totalorder %s30_s7, 0  ;;  %p40_p1 = scmp.ne.s32.totalorder %s838_s20, %s834_s19 }
  0x2c   : > { %p41_p4 = scmp.eq.s32.totalorder %s842_s21, 0  ;;  %p610_p6 = scmp.lt.s32.totalorder %s842_s21, 2 }
  0x2d   : > { %s974_s9 = scalar_select %p31_p2, %s838_s20, %s33_s6  }
  0x2e   : > { %p42_p8 = por %p41_p4, %p40_p1  ;;  %p1184_p10 = scmp.eq.s32.totalorder %s906_s22, 1 }
  0x2f   : > { %s206_s11 = sand.u32 1, %s838_s20   ;;  %s549_s12 = sshll.u32 %s842_s21, 7 }
  0x30   : > { %p978_p12 = por %p1184_p10, %p40_p1  ;;  %s548_s13 = sshll.u32 %s206_s11, 3 }
  0x31   : > { %s987_s15 = scalar_lea.hbm %s1171_s0, %s549_s12  ;;  %s210_s28 = scalar_lea.vmem [#allocation2], %s548_s13 }
  0x32   : > { %s217_s6 = sshll.u32 %s210_s28, 4  ;;  %p989_p11 = pnand %p610_p6, %p42_p8  ;;  %s993_s6 = int_to_ptr.vmem [resolvable:$true] %s217_s6 }
  0x33   : > { %s207_s16 = scalar_lea.sflag [#allocation3], %s206_s11  ;;  %s682_s17 = scalar_lea.hbm %s987_s15, 128 }
  0x34   : > { %p683_p13 = scmp.ne.s32.totalorder %s987_s15, %s682_s17  ;;  %p684_p0 = pneg %p989_p11 }
  0x35   : > { %s687_s12 = scalar_lea.hbm %s1171_s0, 256  ;;  %p688_p7 = scmp.lt.u32.totalorder %s987_s15, %s1171_s0 }
  0x36   : > { %p685_p3 = pnand %p684_p0, %p683_p13  ;;  %p689_p9 = scmp.lt.u32.totalorder %s687_s12, %s682_s17 }
  0x37   : > { %p691_p1 = scmp.lt.u32.totalorder %s682_s17, %s987_s15 }
  0x38   : > { %p686_p5 = pneg %p685_p3  ;;  %p690_p2 = por %p689_p9, %p688_p7 }
  0x3a   : > { %p692_p4 = por %p691_p1, %p690_p2 }
  0x3c   : > { %p693_p6 = pnand %p692_p4, %p686_p5 }
  0x3e   : > { %696 = shalt.err (!%p693_p6)
}
  0x3f   : > { %s697_s11 = scalar_lea.vmem %s993_s6, 128  ;;  %s847_s14 = smov [#allocation2]  }
  0x40   : > { %p698_p8 = scmp.ne.s32.totalorder %s993_s6, %s697_s11  ;;  %s702_s28 = sshll.u32 %s847_s14, 4  ;;  %s703_s28 = int_to_ptr.vmem [resolvable:$false] %s702_s28 }
  0x41   : > { %s704_s27 = scalar_lea.vmem %s703_s28, 256  ;;  %p705_p3 = scmp.lt.s32.totalorder %s993_s6, %s703_s28 }
  0x42   : > { %p700_p10 = pnand %p698_p8, %p684_p0  ;;  %p706_p7 = scmp.lt.s32.totalorder %s704_s27, %s697_s11 }
  0x44   : > { %p701_p13 = pneg %p700_p10  ;;  %p707_p9 = por %p706_p7, %p705_p3 }
  0x46   : > { %p708_p2 = pnand %p707_p9, %p701_p13 }
  0x48   : > { %711 = shalt.err (!%p708_p2)
}
  0x49   : > { %598 = dma.hbm_to_vmem [thread:$0]  (!%p989_p11), %s987_s15, 128, %s993_s6, %s207_s16  }
  0x4a   : > { %p1187_p5 = scmp.ne.s32.totalorder %s1182_s26, 0 }
  0x4b   : > { %s1023_s17 = sand.u32 (!%p1187_p5), 1, %s834_s19   ;;  %p1188_p0 = scmp.ne.s32.totalorder (!%p1187_p5), %s1180_s24, 0 }
  0x4c   : > { %226 = sbr.rel (%p1187_p5) target bundleno = 462 (0x1ce), region = 32  ;;  %s1026_s8 = sshll.u32 (!%p1187_p5), %s1023_s17, 3 }
  0x4d   : > { %s229_s12 = scalar_lea.sflag (!%p1187_p5), [#allocation3], %s1023_s17  ;;  %s232_s13 = scalar_lea.vmem (!%p1187_p5), [#allocation2], %s1026_s8 }
  0x53   : > { %813 = dma.done.wait (%p1188_p0), %s229_s12, 128  }
  0x54   : > { %815 = vsyncadd (%p1188_p0), %s229_s12, 4294967168  ;;  %p1189_p11 = scmp.eq.s32.totalorder %s906_s22, 0 }
  0x56   : > { %817 = dma.done.wait (%p1189_p11), [#allocation6], 256   ;;  %p1190_p1 = pmov %p1189_p11 }
  0x57   : > { %v848_v0 = vmov 0.0   ;;  %vm849_vm0 = vmmov 0   ;;  %v652_v1 = vld [vmem:[#allocation5] sm:$0xff]   ;;  %v653_v2 = vld [vmem:[#allocation5 + $0x8] sm:$0xff]   ;;  %v274_v3 = vld [vmem:[%s232_s13] sm:$0xff]  ;;  %vm299_vm1 = vcmask 261120  }
  0x58   : > { %819 = vsyncadd (%p1190_p1), [#allocation6], 4294967040  ;;  %571 = vmatprep.subr.bf16.mxu0 %v848_v0  ;;  %575 = vmatprep.mubr.msk.bf16.mxu0 %vm849_vm0, %v848_v0  ;;  %v275_v4 = vpack.c.bf16 %v274_v3, %v274_v3  ;;  %v556_v5 = vld [vmem:[%s1173_s2] ss:$0 sm:$0xff]  ;;  %s1043_s15 = sshll.u32 %s906_s22, 7  ;;  %s258_s6 = scalar_lea.vmem [#allocation7], %s1026_s8 }
  0x59   : > { %572 = vmatpush3.bf16.msra.mxu0 %v652_v1  ;;  %s377_s7 = sshll.u32 %s258_s6, 4  ;;  %s1050_s11 = scalar_lea.hbm %s1174_s3, %s1043_s15  ;;  %s1052_s7 = int_to_ptr.vmem [resolvable:$true] %s377_s7 }
  0x5a   : > { %573 = vmatprep.subr.bf16.mxu0 %v848_v0  ;;  %s850_s14 = smov 96   ;;  %s354_s28 = scalar_lea.sflag [#allocation4], %s1023_s17 }
  0x5b   : > { %s712_s27 = scalar_lea.vmem %s1052_s7, 128  ;;  %s851_s12 = smov [#allocation7]  }
  0x5c   : > { %p713_p4 = scmp.ne.s32.totalorder %s1052_s7, %s712_s27  ;;  %s716_s13 = sshll.u32 %s851_s12, 4  ;;  %s717_s13 = int_to_ptr.vmem [resolvable:$false] %s716_s13 }
  0x5d   : > { %574 = vmatpush3.bf16.msra.mxu0 %v653_v2  ;;  %s718_s24 = scalar_lea.vmem %s717_s13, 256  ;;  %p719_p10 = scmp.lt.s32.totalorder %s1052_s7, %s717_s13 }
  0x5e   : > { %p714_p6 = pnand %p713_p4, %p978_p12  ;;  %p720_p13 = scmp.lt.s32.totalorder %s718_s24, %s712_s27 }
  0x60   : > { %576 = vmatmul.mubr.msk.bf16.vlgmr.msra.gmra.mrb[0].mxu0 %vm299_vm1, %v275_v4  ;;  %p715_p8 = pneg %p714_p6  ;;  %p721_p3 = por %p720_p13, %p719_p10 }
  0x62   : > { %p722_p7 = pnand %p721_p3, %p715_p8 }
 0x133   : > { %v337_v6 = vpop.f32.mrb[0].mxu0 }
 0x134   : > { %v338_v7 = vadd.f32 %v556_v5, %v337_v6  ;;  %v577_v8 = vpop.f32.mrb[1].mxu0 }
 0x135   : > { %v340_v9 = vpop.f32.mrb[2].mxu0 }
 0x136   : > { %345 = vrot.lane.b32.xlu0 %v338_v7, %s850_s14  ;;  %v578_v10 = vpop.f32.mrb[3].mxu0  ;;  %343 = vst.msk [vmem:[%s258_s6] sm:$0xff] %vm299_vm1, %v338_v7 }
 0x137   : > { %725 = shalt.err (!%p722_p7)
}
 0x138   : > { %s726_s17 = scalar_lea.hbm %s1050_s11, 128  ;;  %s730_s16 = scalar_lea.hbm %s1174_s3, 256 }
 0x139   : > { %p727_p9 = scmp.ne.s32.totalorder %s1050_s11, %s726_s17  ;;  %p731_p0 = scmp.lt.u32.totalorder %s1050_s11, %s1174_s3 }
 0x13a   : > { %p732_p11 = scmp.lt.u32.totalorder %s730_s16, %s726_s17  ;;  %p734_p4 = scmp.lt.u32.totalorder %s726_s17, %s1050_s11 }
 0x13b   : > { %p728_p2 = pnand %p727_p9, %p978_p12 }
 0x13c   : > { %p733_p1 = por %p732_p11, %p731_p0 }
 0x13d   : > { %p729_p5 = pneg %p728_p2 }
 0x13e   : > { %p735_p6 = por %p734_p4, %p733_p1 }
 0x140   : > { %p736_p8 = pnand %p735_p6, %p729_p5 }
 0x142   : > { %739 = shalt.err (!%p736_p8)
}
 0x143   : > { %585 = dma.vmem_to_hbm [thread:$0]  (%p978_p12), %s1052_s7, 128, %s1050_s11, %s354_s28  }
 0x144   : > { %s852_s27 = smov 64   ;;  %s358_s12 = sand.u32 1, %s906_s22  }
 0x145   : > { %349 = vrot.lane.b32.xlu0 %v338_v7, %s852_s27  ;;  %s265_s13 = scalar_lea.vmem [#allocation8], %s1026_s8  ;;  %s1083_s6 = scalar_lea.hbm %s1175_s4, %s1043_s15 }
 0x146   : > { %s390_s24 = sshll.u32 %s265_s13, 4  ;;  %s272_s16 = scalar_lea.vmem [#allocation10], %s1026_s8  ;;  %s1085_s24 = int_to_ptr.vmem [resolvable:$true] %s390_s24 }
 0x147   : > { %s1090_s29 = sshll.u32 %s272_s16, 4  ;;  %s1093_s22 = scalar_lea.sflag [#allocation9], %s358_s12  ;;  %s1124_s29 = int_to_ptr.vmem [resolvable:$true] %s1090_s29 }
 0x148   : > { %s740_s7 = scalar_lea.vmem %s1085_s24, 128  ;;  %s853_s11 = smov [#allocation8]  }
 0x149   : > { %p741_p10 = scmp.ne.s32.totalorder %s1085_s24, %s740_s7  ;;  %s744_s28 = sshll.u32 %s853_s11, 4  ;;  %s745_s28 = int_to_ptr.vmem [resolvable:$false] %s744_s28 }
 0x14a   : > { %s746_s14 = scalar_lea.vmem %s745_s28, 256  ;;  %p747_p7 = scmp.lt.s32.totalorder %s1085_s24, %s745_s28 }
 0x14b   : > { %p742_p13 = pnand %p741_p10, %p978_p12  ;;  %p748_p9 = scmp.lt.s32.totalorder %s746_s14, %s740_s7 }
 0x14d   : > { %p743_p3 = pneg %p742_p13  ;;  %p749_p2 = por %p748_p9, %p747_p7 }
 0x14f   : > { %p750_p5 = pnand %p749_p2, %p743_p3 }
 0x1a8   : > { %v346_v11 = vpop.permute.xlu0 %345 }
 0x1a9   : > { %348 = vst.msk [vmem:[%s265_s13] sm:$0xff] %vm299_vm1, %v346_v11 }
 0x1aa   : > { %753 = shalt.err (!%p750_p5)
}
 0x1ab   : > { %s754_s27 = scalar_lea.hbm %s1083_s6, 128  ;;  %s758_s17 = scalar_lea.hbm %s1175_s4, 256 }
 0x1ac   : > { %p755_p0 = scmp.ne.s32.totalorder %s1083_s6, %s754_s27  ;;  %p759_p4 = scmp.lt.u32.totalorder %s1083_s6, %s1175_s4 }
 0x1ad   : > { %p760_p6 = scmp.lt.u32.totalorder %s758_s17, %s754_s27  ;;  %p762_p10 = scmp.lt.u32.totalorder %s754_s27, %s1083_s6 }
 0x1ae   : > { %p756_p11 = pnand %p755_p0, %p978_p12 }
 0x1af   : > { %p761_p8 = por %p760_p6, %p759_p4 }
 0x1b0   : > { %p757_p1 = pneg %p756_p11 }
 0x1b1   : > { %p763_p13 = por %p762_p10, %p761_p8 }
 0x1b3   : > { %p764_p3 = pnand %p763_p13, %p757_p1 }
 0x1b5   : > { %767 = shalt.err (!%p764_p3)
}
 0x1b6   : > { %586 = dma.vmem_to_hbm [thread:$0]  (%p978_p12), %s1085_s24, 128, %s1083_s6, %s1093_s22  }
 0x1b7   : > { %s1121_s14 = scalar_lea.hbm %s1176_s5, %s1043_s15  ;;  %v350_v12 = vpop.permute.xlu0 %349  ;;  %s768_s27 = scalar_lea.vmem %s1124_s29, 128 }
 0x1b8   : > { %352 = vst.msk [vmem:[%s272_s16] sm:$0xff] %vm299_vm1, %v350_v12  ;;  %p769_p7 = scmp.ne.s32.totalorder %s1124_s29, %s768_s27  ;;  %s854_s24 = smov [#allocation10]  }
 0x1b9   : > { %s772_s6 = sshll.u32 %s854_s24, 4  ;;  %s773_s6 = int_to_ptr.vmem [resolvable:$false] %s772_s6 }
 0x1ba   : > { %p770_p9 = pnand %p769_p7, %p978_p12  ;;  %s774_s12 = scalar_lea.vmem %s773_s6, 256 }
 0x1bb   : > { %p775_p5 = scmp.lt.s32.totalorder %s1124_s29, %s773_s6  ;;  %p776_p0 = scmp.lt.s32.totalorder %s774_s12, %s768_s27 }
 0x1bc   : > { %p771_p2 = pneg %p770_p9 }
 0x1bd   : > { %p777_p11 = por %p776_p0, %p775_p5 }
 0x1bf   : > { %p778_p1 = pnand %p777_p11, %p771_p2 }
 0x1c1   : > { %781 = shalt.err (!%p778_p1)
}
 0x1c2   : > { %s782_s8 = scalar_lea.hbm %s1121_s14, 128  ;;  %s786_s13 = scalar_lea.hbm %s1176_s5, 256 }
 0x1c3   : > { %p783_p4 = scmp.ne.s32.totalorder %s1121_s14, %s782_s8  ;;  %p787_p10 = scmp.lt.u32.totalorder %s1121_s14, %s1176_s5 }
 0x1c4   : > { %p788_p13 = scmp.lt.u32.totalorder %s786_s13, %s782_s8  ;;  %p790_p7 = scmp.lt.u32.totalorder %s782_s8, %s1121_s14 }
 0x1c5   : > { %p784_p6 = pnand %p783_p4, %p978_p12 }
 0x1c6   : > { %p789_p3 = por %p788_p13, %p787_p10 }
 0x1c7   : > { %p785_p8 = pneg %p784_p6 }
 0x1c8   : > { %p791_p9 = por %p790_p7, %p789_p3 }
 0x1ca   : > { %p792_p2 = pnand %p791_p9, %p785_p8 }
 0x1cc   : > { %795 = shalt.err (!%p792_p2)
}
 0x1cd   : > { %587 = dma.vmem_to_hbm [thread:$0]  (%p978_p12), %s1124_s29, 128, %s1121_s14, %s1093_s22  }
 0x1ce PF: > { %s415_s11 = sand.u32 1, %s830_s18   ;;  %p1191_p5 = scmp.ne.s32.totalorder %s1181_s25, 0 }
 0x1cf   : > { %p1192_p0 = scmp.ge.s32.totalorder %s842_s21, 2  ;;  %s416_s7 = scalar_lea.sflag [#allocation4], %s415_s11 }
 0x1d1   : > { %p600_p11 = pnand %p1192_p0, %p1191_p5 }
 0x1d3   : > { %821 = dma.done.wait (!%p600_p11), %s416_s7, 128  }
 0x1d4   : > { %823 = vsyncadd (!%p600_p11), %s416_s7, 4294967168  ;;  %s424_s28 = sand.u32 1, %s544_s23  }
 0x1d5   : > { %s425_s27 = scalar_lea.sflag [#allocation9], %s424_s28 }
 0x1d6   : > { %825 = dma.done.wait (!%p600_p11), %s425_s27, 256  }
 0x1d7   : > { %827 = vsyncadd (!%p600_p11), %s425_s27, 4294967040  ;;  %p23_p12 = scmp.ge.s32.totalorder %s943_s30, 4   ;;  %s1193_s18 = smov %s834_s19 }
 0x1d8   : > { %s1194_s19 = smov %s838_s20  ;;  %s1195_s20 = smov %s974_s9 }
 0x1d9   : > { %s1196_s21 = smov %s943_s30  ;;  %25 = sbr.rel (!%p23_p12) target bundleno = 8 (0x8), region = 113 }
 0x1e0   :  { %439 = vsyncpa [#allocation3], 1 }
 0x1e1   :  { %441 = vsyncpa [#allocation3 + $0x1], 1 }
 0x1e2   :  { %442 = vsyncpa [#allocation6], 1 }
 0x1e3   :  { %443 = vsyncpa [#allocation4], 1 }
 0x1e4   :  { %445 = vsyncpa [#allocation4 + $0x1], 1 }
 0x1e5   :  { %446 = vsyncpa [#allocation9], 1 }
 0x1e6   :  { %448 = vsyncpa [#allocation9 + $0x1], 1 }

</bundles_post_ra>
